<compile_context>
chip_gen: v7x
topology: tpu7x:2x2x1
jax: 0.10.0
libtpu: 0.0.40
codegen_flags: <defaults>
</compile_context>

<pallas_src>
import functools

import jax
import jax.numpy as jnp
from jax.experimental import pallas as pl
from jax.experimental.pallas import tpu as pltpu


_LANE = 128
_VMEM_WORKSET_BYTES = 16 * 1024 * 1024   # target working set (input blocks + acc + f32 temps)
_VMEM_LIMIT_BYTES = 32 * 1024 * 1024     # scoped-VMEM limit; safe on v5e/v6e (128 MiB) and v7x (64 MiB)


def _focal_loss_kernel(score_ref, target_ref, out_ref, acc_ref, *,
                       n_rows, tiles_per_split, lane_dense):
    """Processes one (tile, C) slab of scores in native (batch-major) layout.

    Grid = (num_splits, tiles_per_split):
      axis 0 ("parallel")  — batch split across TensorCores (> 1 only on v7x).
      axis 1 ("arbitrary") — reduction over the batch tiles of one split, accumulated in a
                             VMEM vector accumulator; reduced to a scalar only in the last step.
    """
    s = pl.program_id(0)
    i = pl.program_id(1)

    @pl.when(i == 0)
    def _():
        acc_ref[...] = jnp.zeros_like(acc_ref)

    x = score_ref[...].astype(jnp.float32)            # (tile, C); cast in VMEM (bf16 inputs OK)
    tile_rows, c = score_ref.shape
    row0 = (s * tiles_per_split + i) * tile_rows      # first global batch row of this tile

    if lane_dense:
        # C < 128: put the batch on the 128-lane axis so the elementwise chain is lane-dense.
        # The relayout runs on the XLU, which is otherwise idle in this kernel.
        x = pltpu.einshape("nc->cn", x)               # (C, tile)
        tgt = target_ref[...]                         # (1, tile) int32, lane-dense
        class_ids = jax.lax.broadcasted_iota(jnp.int32, (c, 1), 0)
        class_axis = 0

        def batch_valid():                            # only materialized for ragged tiles
            pos = row0 + jax.lax.broadcasted_iota(jnp.int32, (1, tile_rows), 1)
            return pos < n_rows
    else:
        # C >= 128: native layout is already lane-dense over classes.
        tgt = target_ref[...]                         # (tile, 1) int32
        class_ids = jax.lax.broadcasted_iota(jnp.int32, (1, c), 1)
        class_axis = 1

        def batch_valid():
            pos = row0 + jax.lax.broadcasted_iota(jnp.int32, (tile_rows, 1), 0)
            return pos < n_rows

    # Numerically stable softmax over the class axis.
    m = jnp.max(x, axis=class_axis, keepdims=True)
    e = jnp.exp(x - m)
    denom = jnp.sum(e, axis=class_axis, keepdims=True)
    p = e * pl.reciprocal(denom)                      # exact reciprocal (EUP)

    # pt = onehot * p + (1 - onehot) * (1 - p), as a single boolean select.
    is_tgt = class_ids == tgt
    one_minus_p = 1.0 - p
    pt = jnp.where(is_tgt, p, one_minus_p)
    omp = 1.0 - pt
    # Accumulate +(1 - pt)^2 * log(pt); the sign is folded into the final reduction.
    # TODO(synk): pt can underflow to 0 -> log(pt) = -inf; PyTorch has the same hazard, kept as-is.
    term = omp * omp * jnp.log(pt)

    full_tile = row0 + tile_rows <= n_rows

    @pl.when(full_tile)
    def _():
        acc_ref[...] += term                          # interior tiles: no masking work at all

    @pl.when(jnp.logical_not(full_tile))
    def _():
        # Ragged edge tile or clamped duplicate tile: zero out-of-range batch entries.
        # (select, not multiply, so stale-VMEM NaN/Inf garbage cannot leak into the sum)
        acc_ref[...] += jnp.where(batch_valid(), term, 0.0)

    @pl.when(i == pl.num_programs(1) - 1)
    def _():
        out_ref[0, 0] = -jnp.sum(acc_ref[...])        # un-normalized split partial; wrapper / N


def _auto_tile(n, c, itemsize):
    """Batch tile sized against a VMEM working-set budget (not a fixed column count).

    Bytes per batch element ~ C * (2 * itemsize   # double-buffered input block
                                   + 4            # f32 accumulator
                                   + 8 * 4)       # in-kernel f32 temporaries (with headroom)
    """
    per_row = c * (2 * itemsize + 4 + 8 * 4)
    t = _VMEM_WORKSET_BYTES // max(per_row, 1)
    return max(_LANE, (int(t) // _LANE) * _LANE)


def _default_num_splits(tiles_total):
    """Split the batch across TensorCores only where it helps: v7x (2 TCs/chip), enough tiles."""
    if tiles_total < 8:
        return 1
    try:
        kind = jax.devices()[0].device_kind.lower()
    except Exception:
        kind = ""
    return 2 if ("v7" in kind or "7x" in kind) else 1


def focal_loss(score, target, *, tile_n=None, num_splits=None):
    """mean_n( sum_c( -(1 - pt)^2 * log(pt) ) ) with pt from softmax(score, axis=1)."""
    n, c = score.shape
    lane_dense = c < _LANE                    # small class counts get an in-kernel relayout

    if tile_n is None:
        tile_n = _auto_tile(n, c, jnp.dtype(score.dtype).itemsize)
    # Blocks smaller than the full batch must keep the batch axis a multiple of 128 so the
    # lane-dense target row (and all loads/stores) stay aligned and unmasked.
    tile = n if n <= int(tile_n) else max(_LANE, (int(tile_n) // _LANE) * _LANE)
    tiles_total = pl.cdiv(n, tile)

    if num_splits is None:
        num_splits = _default_num_splits(tiles_total)
    num_splits = max(1, min(int(num_splits), tiles_total))
    tiles_per_split = pl.cdiv(tiles_total, num_splits)

    # Clamp block indices so over-allocated (s, i) slots re-read a valid tile; their
    # contribution is zeroed by the in-kernel batch-validity mask (no double counting).
    def block_idx(s, i):
        return jnp.minimum(s * tiles_per_split + i, tiles_total - 1)

    score_spec = pl.BlockSpec((tile, c), lambda s, i: (block_idx(s, i), 0))
    if lane_dense:
        target_arr = target.reshape(1, n).astype(jnp.int32)       # lane-dense row
        target_spec = pl.BlockSpec((1, tile), lambda s, i: (0, block_idx(s, i)))
        acc_shape = (c, tile)
    else:
        target_arr = target.reshape(n, 1).astype(jnp.int32)       # broadcasts across classes
        target_spec = pl.BlockSpec((tile, 1), lambda s, i: (block_idx(s, i), 0))
        acc_shape = (tile, c)

    kernel = functools.partial(
        _focal_loss_kernel, n_rows=n, tiles_per_split=tiles_per_split, lane_dense=lane_dense)

    partials = pl.pallas_call(
        kernel,
        out_shape=jax.ShapeDtypeStruct((num_splits, 1), jnp.float32),
        grid=(num_splits, tiles_per_split),
        in_specs=[score_spec, target_spec],
        out_specs=pl.BlockSpec((1, 1), lambda s, i: (s, 0),
                               memory_space=pltpu.MemorySpace.SMEM),
        scratch_shapes=[pltpu.VMEM(acc_shape, jnp.float32)],
        compiler_params=pltpu.CompilerParams(
            dimension_semantics=("parallel", "arbitrary"),
            vmem_limit_bytes=_VMEM_LIMIT_BYTES),
    )(score, target_arr)

    return jnp.sum(partials) / jnp.float32(n)


def focal_loss_reference(score, target):
    # pure-JAX reference mirroring the PyTorch forward
    c = score.shape[1]
    p = jax.nn.softmax(score.astype(jnp.float32), axis=1)
    onehot = jax.nn.one_hot(target, c, dtype=jnp.float32)
    pt = onehot * p + (1.0 - onehot) * (1.0 - p)
    return jnp.mean(jnp.sum(-(1.0 - pt) ** 2 * jnp.log(pt), axis=1))


if __name__ == "__main__":
    key = jax.random.PRNGKey(0)
    k1, k2, k3, k4, k5, k6 = jax.random.split(key, 6)

    # 1) tiny shape, single block, small-C path (in-kernel lane-dense relayout).
    N, C = 8, 16
    score = jax.random.normal(k1, (N, C), dtype=jnp.float32)
    target = jax.random.randint(k2, (N,), 0, C, dtype=jnp.int32)
    loss = jax.block_until_ready(focal_loss(score, target))
    ref = focal_loss_reference(score, target)
    assert jnp.isfinite(loss), "kernel produced non-finite loss"
    assert jnp.allclose(loss, ref, rtol=1e-5, atol=1e-5), (loss, ref)

    # 2) multi-tile grid + explicit 2-way split: exercises the ragged edge tile and the
    #    clamped duplicate tile (masked to zero contribution).
    N2, C2 = 300, 16
    score2 = jax.random.normal(k3, (N2, C2), dtype=jnp.float32)
    target2 = jax.random.randint(k4, (N2,), 0, C2, dtype=jnp.int32)
    loss2 = jax.block_until_ready(focal_loss(score2, target2, tile_n=128, num_splits=2))
    ref2 = focal_loss_reference(score2, target2)
    assert jnp.isfinite(loss2), "tiled kernel produced non-finite loss"
    assert jnp.allclose(loss2, ref2, rtol=1e-5, atol=1e-5), (loss2, ref2)

    # 3) C >= 128: native-layout path (classes already on the lane axis, no relayout).
    N3, C3 = 64, 128
    score3 = jax.random.normal(k5, (N3, C3), dtype=jnp.float32)
    target3 = jax.random.randint(k6, (N3,), 0, C3, dtype=jnp.int32)
    loss3 = jax.block_until_ready(focal_loss(score3, target3))
    ref3 = focal_loss_reference(score3, target3)
    assert jnp.isfinite(loss3), "native-layout kernel produced non-finite loss"
    assert jnp.allclose(loss3, ref3, rtol=1e-5, atol=1e-5), (loss3, ref3)

    print("KERNEL_OK")
</pallas_src>

<mosaic_0001>
module attributes {stable_mosaic.version = 11 : i64} {
  func.func @_focal_loss_kernel(%arg0: i32, %arg1: i32, %arg2: memref<8x16xf32, #tpu.memory_space<vmem>>, %arg3: memref<1x8xi32, #tpu.memory_space<vmem>>, %arg4: memref<1x1xf32, #tpu.memory_space<smem>>, %arg5: memref<16x8xf32, #tpu.memory_space<vmem>>) attributes {dimension_semantics = [#tpu.dimension_semantics<parallel>, #tpu.dimension_semantics<arbitrary>], iteration_bounds = array<i64: 1, 1>, scalar_prefetch = 0 : i64, scratch_operands = 1 : i64, tpu.core_type = #tpu.core_type<tc>, window_params = [{transform_indices = @transform_0, window_bounds = array<i64: 8, 16>}, {transform_indices = @transform_1, window_bounds = array<i64: 1, 8>}, {transform_indices = @transform_2, window_bounds = array<i64: 1, 1>}]} {
    %c0_i32 = arith.constant 0 : i32
    %0 = arith.cmpi eq, %arg1, %c0_i32 : i32
    %1 = arith.extui %0 : i1 to i32
    %c0_i32_0 = arith.constant 0 : i32
    %2 = arith.cmpi ne, %1, %c0_i32_0 : i32
    scf.if %2 {
      %cst_13 = arith.constant 0.000000e+00 : f32
      %41 = vector.broadcast %cst_13 : f32 to vector<16x8xf32>
      %c0_14 = arith.constant 0 : index
      %c0_15 = arith.constant 0 : index
      %42 = vector.load %arg5[%c0_14, %c0_15] : memref<16x8xf32, #tpu.memory_space<vmem>>, vector<16x8xf32>
      tpu.vector_store %arg5[%c0_14, %c0_15], %41 {strides = array<i32>} : memref<16x8xf32, #tpu.memory_space<vmem>>, vector<16x8xf32>,
    } else {
    }
    %c0 = arith.constant 0 : index
    %c0_1 = arith.constant 0 : index
    %3 = vector.load %arg2[%c0, %c0_1] : memref<8x16xf32, #tpu.memory_space<vmem>>, vector<8x16xf32>
    %c1_i32 = arith.constant 1 : i32
    %4 = arith.muli %arg0, %c1_i32 : i32
    %5 = arith.addi %4, %arg1 : i32
    %c8_i32 = arith.constant 8 : i32
    %6 = arith.muli %5, %c8_i32 : i32
    %7 = tpu.transpose %3, [1, 0] : vector<8x16xf32> -> vector<16x8xf32>
    %c0_2 = arith.constant 0 : index
    %c0_3 = arith.constant 0 : index
    %8 = vector.load %arg3[%c0_2, %c0_3] : memref<1x8xi32, #tpu.memory_space<vmem>>, vector<1x8xi32>
    %9 = tpu.iota {dimensions = array<i32: 0>} : vector<16x1xi32>
    %cst = arith.constant dense<0xFF800000> : vector<8xf32>
    %10 = vector.multi_reduction <maximumf>, %7, %cst [0] : vector<16x8xf32> to vector<8xf32>
    %11 = vector.shape_cast %10 : vector<8xf32> to vector<1x8xf32>
    %12 = vector.broadcast %11 : vector<1x8xf32> to vector<16x8xf32>
    %13 = arith.subf %7, %12 : vector<16x8xf32>
    %14 = math.exp %13 : vector<16x8xf32>
    %cst_4 = arith.constant dense<0.000000e+00> : vector<8xf32>
    %15 = vector.multi_reduction <add>, %14, %cst_4 [0] : vector<16x8xf32> to vector<8xf32>
    %16 = vector.shape_cast %15 : vector<8xf32> to vector<1x8xf32>
    %17 = tpu.reciprocal %16 : vector<1x8xf32> -> vector<1x8xf32>
    %18 = vector.broadcast %17 : vector<1x8xf32> to vector<16x8xf32>
    %19 = arith.mulf %14, %18 : vector<16x8xf32>
    %20 = vector.broadcast %9 : vector<16x1xi32> to vector<16x8xi32>
    %21 = vector.broadcast %8 : vector<1x8xi32> to vector<16x8xi32>
    %22 = arith.cmpi eq, %20, %21 : vector<16x8xi32>
    %cst_5 = arith.constant 1.000000e+00 : f32
    %23 = vector.broadcast %cst_5 : f32 to vector<16x8xf32>
    %24 = arith.subf %23, %19 : vector<16x8xf32>
    %25 = arith.select %22, %19, %24 : vector<16x8xi1>, vector<16x8xf32>
    %cst_6 = arith.constant 1.000000e+00 : f32
    %26 = vector.broadcast %cst_6 : f32 to vector<16x8xf32>
    %27 = arith.subf %26, %25 : vector<16x8xf32>
    %28 = arith.mulf %27, %27 : vector<16x8xf32>
    %29 = math.log %25 : vector<16x8xf32>
    %30 = arith.mulf %28, %29 : vector<16x8xf32>
    %c8_i32_7 = arith.constant 8 : i32
    %31 = arith.addi %6, %c8_i32_7 : i32
    %c8_i32_8 = arith.constant 8 : i32
    %32 = arith.cmpi sle, %31, %c8_i32_8 : i32
    %33 = arith.extui %32 : i1 to i32
    %c0_i32_9 = arith.constant 0 : i32
    %34 = arith.cmpi ne, %33, %c0_i32_9 : i32
    scf.if %34 {
      %c0_13 = arith.constant 0 : index
      %c0_14 = arith.constant 0 : index
      %41 = vector.load %arg5[%c0_13, %c0_14] : memref<16x8xf32, #tpu.memory_space<vmem>>, vector<16x8xf32>
      %42 = arith.addf %41, %30 : vector<16x8xf32>
      %c0_15 = arith.constant 0 : index
      %c0_16 = arith.constant 0 : index
      %43 = vector.load %arg5[%c0_15, %c0_16] : memref<16x8xf32, #tpu.memory_space<vmem>>, vector<16x8xf32>
      tpu.vector_store %arg5[%c0_15, %c0_16], %42 {strides = array<i32>} : memref<16x8xf32, #tpu.memory_space<vmem>>, vector<16x8xf32>,
    } else {
    }
    %true = arith.constant true
    %35 = arith.xori %32, %true : i1
    %36 = arith.extui %35 : i1 to i32
    %c0_i32_10 = arith.constant 0 : i32
    %37 = arith.cmpi ne, %36, %c0_i32_10 : i32
    scf.if %37 {
      %c0_13 = arith.constant 0 : index
      %c0_14 = arith.constant 0 : index
      %41 = vector.load %arg5[%c0_13, %c0_14] : memref<16x8xf32, #tpu.memory_space<vmem>>, vector<16x8xf32>
      %42 = tpu.iota {dimensions = array<i32: 1>} : vector<1x8xi32>
      %43 = vector.broadcast %6 : i32 to vector<1x8xi32>
      %44 = arith.addi %43, %42 : vector<1x8xi32>
      %c8_i32_15 = arith.constant 8 : i32
      %45 = vector.broadcast %c8_i32_15 : i32 to vector<1x8xi32>
      %46 = arith.cmpi slt, %44, %45 : vector<1x8xi32>
      %cst_16 = arith.constant 0.000000e+00 : f32
      %47 = vector.shape_cast %46 : vector<1x8xi1> to vector<1x8xi1>
      %48 = vector.broadcast %47 : vector<1x8xi1> to vector<16x8xi1>
      %49 = vector.broadcast %cst_16 : f32 to vector<16x8xf32>
      %50 = arith.select %48, %30, %49 : vector<16x8xi1>, vector<16x8xf32>
      %51 = arith.addf %41, %50 : vector<16x8xf32>
      %c0_17 = arith.constant 0 : index
      %c0_18 = arith.constant 0 : index
      %52 = vector.load %arg5[%c0_17, %c0_18] : memref<16x8xf32, #tpu.memory_space<vmem>>, vector<16x8xf32>
      tpu.vector_store %arg5[%c0_17, %c0_18], %51 {strides = array<i32>} : memref<16x8xf32, #tpu.memory_space<vmem>>, vector<16x8xf32>,
    } else {
    }
    %c0_i32_11 = arith.constant 0 : i32
    %38 = arith.cmpi eq, %arg1, %c0_i32_11 : i32
    %39 = arith.extui %38 : i1 to i32
    %c0_i32_12 = arith.constant 0 : i32
    %40 = arith.cmpi ne, %39, %c0_i32_12 : i32
    scf.if %40 {
      %c0_13 = arith.constant 0 : index
      %c0_14 = arith.constant 0 : index
      %41 = vector.load %arg5[%c0_13, %c0_14] : memref<16x8xf32, #tpu.memory_space<vmem>>, vector<16x8xf32>
      %42 = vector.shape_cast %41 : vector<16x8xf32> to vector<1x16x8xf32>
      %cst_15 = arith.constant dense<0.000000e+00> : vector<1xf32>
      %43 = vector.multi_reduction <add>, %42, %cst_15 [1, 2] : vector<1x16x8xf32> to vector<1xf32>
      %44 = vector.shape_cast %43 : vector<1xf32> to vector<1x1x1xf32>
      %45 = vector.extract %44[0, 0, 0] : f32 from vector<1x1x1xf32>
      %cst_16 = arith.constant 0.000000e+00 : f32
      %46 = arith.subf %cst_16, %45 : f32
      %c0_17 = arith.constant 0 : index
      %c0_18 = arith.constant 0 : index
      %47 = memref.load %arg4[%c0_17, %c0_18] : memref<1x1xf32, #tpu.memory_space<smem>>
      memref.store %46, %arg4[%c0_17, %c0_18] : memref<1x1xf32, #tpu.memory_space<smem>>
    } else {
    }
    return
  }
  func.func @transform_0(%arg0: i32, %arg1: i32) -> (i32, i32) {
    %c1_i32 = arith.constant 1 : i32
    %0 = arith.muli %arg0, %c1_i32 : i32
    %1 = arith.addi %0, %arg1 : i32
    %c0_i32 = arith.constant 0 : i32
    %2 = arith.minsi %1, %c0_i32 : i32
    %c0_i32_0 = arith.constant 0 : i32
    %c0_i32_1 = arith.constant 0 : i32
    return %2, %c0_i32_0 : i32, i32
  }
  func.func @transform_1(%arg0: i32, %arg1: i32) -> (i32, i32) {
    %c1_i32 = arith.constant 1 : i32
    %0 = arith.muli %arg0, %c1_i32 : i32
    %1 = arith.addi %0, %arg1 : i32
    %c0_i32 = arith.constant 0 : i32
    %2 = arith.minsi %1, %c0_i32 : i32
    %c0_i32_0 = arith.constant 0 : i32
    %c0_i32_1 = arith.constant 0 : i32
    return %c0_i32_0, %2 : i32, i32
  }
  func.func @transform_2(%arg0: i32, %arg1: i32) -> (i32, i32) {
    %c0_i32 = arith.constant 0 : i32
    %c0_i32_0 = arith.constant 0 : i32
    return %arg0, %c0_i32 : i32, i32
  }
}

</mosaic_0001>

<bundles_post_ra>
// kernel: tpu_custom_call.1
= control target key start
LH: loop header
LB: loop body
LE: loop exit
PB: predicated region body
PF: predicated region fallthrough
CT: control target
= control target key end

     0   :  { %7 = vsyncpa [#allocation4], 0  ;;  %s326_s0 = inlined_call_operand.hbm [shape: f32[8,16], index: 0, kind: input, shape index: {}]   ;;  %s327_s1 = inlined_call_operand.vmem [shape: s32[1,8], index: 1, kind: input, shape index: {}]   ;;  %s328_s2 = inlined_call_operand.hbm [shape: f32[1,1], index: 2, kind: output, shape index: {}]  }
   0x1   :  { %8 = vsyncpa [#allocation5], 0  ;;  %s271_s9 = smov [#allocation3]   ;;  %s235_s13 = scalar_lea.hbm %s326_s0, 128 }
   0x2   :  { %s20_s10 = sshll.u32 %s271_s9, 4  ;;  %p236_p0 = scmp.ne.s32.totalorder %s326_s0, %s235_s13  ;;  %s21_s10 = int_to_ptr.vmem [resolvable:$true] %s20_s10 }
   0x3   :  { %p239_p1 = scmp.lt.u32.totalorder %s235_s13, %s326_s0 }
   0x5   :  { %p241_p2 = pnand %p239_p1, %p236_p0 }
   0x7   :  { %244 = shalt.err (!%p241_p2)
}
   0x8   :  { %s245_s18 = scalar_lea.vmem %s21_s10, 128  ;;  %p250_p4 = scmp.lt.s32.totalorder %s21_s10, %s21_s10 }
   0x9   :  { %p246_p3 = scmp.ne.s32.totalorder %s21_s10, %s245_s18  ;;  %p251_p5 = scmp.lt.s32.totalorder %s245_s18, %s245_s18 }
   0xb   :  { %p252_p6 = por %p251_p5, %p250_p4 }
   0xd   :  { %p253_p7 = pnand %p252_p6, %p246_p3 }
   0xf   :  { %256 = shalt.err (!%p253_p7)
}
  0x10   :  { %23 = dma.hbm_to_vmem [thread:$0]  %s326_s0, 128, %s21_s10, [#allocation4]  }
  0x11   :  { %267 = dma.done.wait [#allocation4], 128  }
  0x12   :  { %268 = vsyncadd [#allocation4], 4294967168  ;;  %v63_v0 = vld [vmem:[#allocation3] sm:$0xff]  ;;  %vm60_vm0 = vcmask 64512   ;;  %v272_v1 = vmov 0.0   ;;  %v99_v28 = vlaneseq  ;;  %s257_s25 = scalar_lea.hbm %s328_s2, 16 }
  0x13   :  { %66 = vxpose.xlu0.b32.start.end [1/1] (short) (narrow) %v63_v0, 16  ;;  %61 = vst.msk [vmem:[#allocation2] sm:$0xff] %vm60_vm0, %v272_v1  ;;  %62 = vst.msk [vmem:[#allocation2 + $0x8] sm:$0xff] %vm60_vm0, %v272_v1  ;;  %v219_v31 = vld [vmem:[%s327_s1] ss:$0 sm:$0xff]  ;;  %p258_p8 = scmp.ne.s32.totalorder %s328_s2, %s257_s25  ;;  %p261_p9 = scmp.lt.u32.totalorder %s257_s25, %s328_s2 }
  0x14   :  { %v100_v29 = vshrl.u32 %v99_v28, 7 }
  0x15   :  { %p263_p10 = pnand %p261_p9, %p258_p8 }
  0x16   :  { %v101_v30 = vadd.s32 8, %v100_v29  ;;  %vm134_vm1 = vcmp.eq.s32.totalorder %v100_v29, %v219_v31 }
  0x18   :  { %vm135_vm2 = vcmp.eq.s32.totalorder %v101_v30, %v219_v31 }
  0x1a   :  { %v155_v47 = vld [vmem:[#allocation2] sm:$0xff]  ;;  %v156_v49 = vld [vmem:[#allocation2 + $0x8] sm:$0xff] }
  0x93   :  { %v82_v2 = vpop.trf.xlu0 }
  0x94   :  { %v103_v4 = vsel %vm60_vm0, %v82_v2, -inf }
  0x97   :  { %v83_v3 = vpop.trf.xlu0 }
  0x98   :  { %v104_v5 = vsel %vm60_vm0, %v83_v3, -inf }
  0x99   :  { %v105_v6 = vmax.f32 %v103_v4, %v104_v5 }
  0x9b   :  { %v106_v7 = vrot.slane %v105_v6, 4 }
  0x9d   :  { %v107_v8 = vmax.f32 %v105_v6, %v106_v7 }
  0x9f   :  { %v108_v9 = vrot.slane %v107_v8, 2 }
  0xa1   :  { %v109_v10 = vmax.f32 %v107_v8, %v108_v9 }
  0xa3   :  { %v110_v11 = vrot.slane %v109_v10, 1 }
  0xa5   :  { %v111_v12 = vmax.f32 %v109_v10, %v110_v11 }
  0xa7   :  { %v112_v13 = vsub.f32 %v82_v2, %v111_v12  ;;  %v113_v14 = vsub.f32 %v83_v3, %v111_v12 }
  0xa9   :  { %v114_v15 = vmul.f32 1.442695, %v112_v13  ;;  %v116_v16 = vmul.f32 1.442695, %v113_v14 }
  0xab   :  { %225 = vpow2.f32 %v114_v15 }
  0xac   :  { %227 = vpow2.f32 %v116_v16 }
  0xb5   :  { %v226_v17 = vpop.eup %225 }
  0xb6   :  { %v228_v18 = vpop.eup %227  ;;  %v118_v19 = vsel %vm60_vm0, %v226_v17, 0.0 }
  0xb7   :  { %v119_v20 = vsel %vm60_vm0, %v228_v18, 0.0 }
  0xb8   :  { %v120_v21 = vadd.f32 %v119_v20, %v118_v19 }
  0xba   :  { %v121_v22 = vrot.slane %v120_v21, 4 }
  0xbc   :  { %v122_v23 = vadd.f32 %v121_v22, %v120_v21 }
  0xbe   :  { %v123_v24 = vrot.slane %v122_v23, 2 }
  0xc0   :  { %v124_v25 = vadd.f32 %v123_v24, %v122_v23 }
  0xc2   :  { %v125_v26 = vrot.slane %v124_v25, 1 }
  0xc4   :  { %v126_v27 = vadd.f32 %v125_v26, %v124_v25 }
  0xc6   :  { %229 = vrcp.f32 %v126_v27 }
  0xd0   :  { %v230_v32 = vpop.eup %229 }
  0xd1   :  { %v128_v33 = vmul.f32 %v230_v32, %v226_v17  ;;  %v129_v34 = vmul.f32 %v230_v32, %v228_v18 }
  0xd3   :  { %v136_v35 = vsub.f32 1.0, %v128_v33  ;;  %v137_v36 = vsub.f32 1.0, %v129_v34 }
  0xd5   :  { %v138_v37 = vsel %vm134_vm1, %v128_v33, %v136_v35  ;;  %v139_v38 = vsel %vm135_vm2, %v129_v34, %v137_v36 }
  0xd6   :  { %231 = vlog2.f32 %v138_v37  ;;  %v140_v39 = vsub.f32 1.0, %v138_v37  ;;  %v141_v40 = vsub.f32 1.0, %v139_v38 }
  0xd7   :  { %233 = vlog2.f32 %v139_v38 }
  0xd8   :  { %v142_v43 = vmul.f32 %v140_v39, %v140_v39  ;;  %v143_v45 = vmul.f32 %v141_v40, %v141_v40 }
  0xe0   :  { %v232_v41 = vpop.eup %231 }
  0xe1   :  { %v234_v42 = vpop.eup %233  ;;  %v145_v44 = vmul.f32 0.6931472, %v232_v41 }
  0xe2   :  { %v147_v46 = vmul.f32 0.6931472, %v234_v42 }
  0xe3   :  { %v148_v48 = vmul.f32 %v145_v44, %v142_v43 }
  0xe4   :  { %v149_v50 = vmul.f32 %v147_v46, %v143_v45 }
  0xe5   :  { %v157_v51 = vadd.f32 %v155_v47, %v148_v48 }
  0xe6   :  { %v158_v52 = vadd.f32 %v156_v49, %v149_v50 }
  0xe7   :  { %159 = vst.msk [vmem:[#allocation2] sm:$0xff] %vm60_vm0, %v157_v51 }
  0xe8   :  { %160 = vst.msk [vmem:[#allocation2 + $0x8] sm:$0xff] %vm60_vm0, %v158_v52 }
  0xee   :  { %v183_v53 = vld [vmem:[#allocation2] sm:$0xff] }
  0xef   :  { %v184_v54 = vld [vmem:[#allocation2 + $0x8] sm:$0xff]  ;;  %v185_v55 = vsel %vm60_vm0, %v183_v53, 0.0 }
  0xf0   :  { %v186_v56 = vsel %vm60_vm0, %v184_v54, 0.0 }
  0xf1   :  { %v187_v57 = vadd.f32 %v186_v56, %v185_v55 }
  0xf3   :  { %188 = vadd.xlane.f32.xlu0 %v187_v57 }
 0x180   :  { %v189_v58 = vpop.xlane.xlu0 %188 }
 0x181   :  { %v190_v59 = vrot.slane %v189_v58, 4 }
 0x183   :  { %v191_v60 = vadd.f32 %v190_v59, %v189_v58 }
 0x185   :  { %v192_v61 = vrot.slane %v191_v60, 2 }
 0x187   :  { %v193_v62 = vadd.f32 %v192_v61, %v191_v60 }
 0x189   :  { %v194_v63 = vrot.slane %v193_v62, 1 }
 0x18b   :  { %v195_v0 = vadd.f32 %v194_v63, %v193_v62 }
 0x18d   :  { %220 = vpush %v195_v0 }
 0x1be   :  { %s221_s1 = spop %220 }
 0x1bf   :  { %s197_s22 = ssub.f32 0.0, %s221_s1 }
 0x1c1   :  { %199 = sst [smem:[#allocation6]] %s197_s22 }
 0x1c2   :  { %266 = shalt.err (!%p263_p10)
}
 0x1c3   :  { %s273_s30 = smov [#allocation6]  }
 0x1c4   :  { %207 = dma.smem_to_hbm %s273_s30, 16, %s328_s2, [#allocation5]  }
 0x1c5   :  { %269 = dma.done.wait [#allocation5], 16  }
 0x1c6   :  { %270 = vsyncadd [#allocation5], 4294967280 }
 0x1c7   :  { %211 = sfence }
 0x1c8   :  { %212 = vsyncpa [#allocation4], 1 }
 0x1c9   :  { %213 = vsyncpa [#allocation5], 1 }

</bundles_post_ra>
